<compile_context>
chip_gen: v6e
topology: v6e:2x2x1
jax: 0.10.0
libtpu: 0.0.40
codegen_flags: <defaults>
</compile_context>

<pallas_src>
import jax
import jax.numpy as jnp
from jax.experimental import pallas as pl
from jax.experimental.pallas import tpu as pltpu

LANES = 128          # vreg lane width
SMALL_N = 1 << 16    # below this, a fused XLA elementwise op beats a kernel launch


def _cdiv(a, b):
    return -(-a // b)


def _round_up(a, b):
    return _cdiv(a, b) * b


def _sublane_align(dtype):
    # 8 sublanes for 32-bit, 16 for 16-bit, 32 for 8-bit packed dtypes.
    return max(8, 32 // jnp.dtype(dtype).itemsize)


def linear_kernel(w_ref, b_ref, x_ref, o_ref):
    # w_ref, b_ref: (1,) float32 scalars in SMEM; x_ref/o_ref: (tile_rows, 128) VMEM.
    w = w_ref[0]
    b = b_ref[0]
    # fma in f32 regardless of streaming dtype (free VPU slack in a mem-bound
    # kernel); cast back on store.
    o_ref[...] = (x_ref[...].astype(jnp.float32) * w + b).astype(o_ref.dtype)


def linear_forward(x, weight, bias, *, max_tile_rows=4096, small_n_threshold=SMALL_N):
    """x: (N, 1); weight: (1, 1); bias: (1,) -> (N, 1).  y = x * w + b."""
    n, in_features = x.shape
    assert in_features == 1, "LinearModel is a 1 -> 1 linear layer"
    dtype = x.dtype

    # Keep params as 32-bit scalars (SMEM is a 32-bit scalar memory).
    w32 = weight.astype(jnp.float32).reshape(1)
    b32 = bias.astype(jnp.float32).reshape(1)

    # Small-N fallback: custom-call launch + DMA setup would dominate.
    if n < small_n_threshold:
        return (x.astype(jnp.float32) * w32[0] + b32[0]).astype(dtype)

    align = _sublane_align(dtype)
    x_flat = x.reshape(-1)

    if n % LANES == 0:
        # Copy-free lane-dense view: no pad, no extra HBM pass.
        rows = n // LANES
        padded_n = n
        x_slab = x_flat.reshape(rows, LANES)
    else:
        # Ragged tail: minimal pad (< align*128 elements). allow_input_fusion
        # below lets XLA fuse this pad/reshape into the kernel's input DMA.
        rows = _round_up(_cdiv(n, LANES), align)
        padded_n = rows * LANES
        x_slab = jnp.pad(x_flat, (0, padded_n - n)).reshape(rows, LANES)

    # Tile selection: multiple of `align`, <= max_tile_rows, and at most ~half
    # the rows so the parallel grid has >= 2 steps (v7x has 2 TensorCores).
    if rows < 2 * align:
        tile_rows = rows  # single full-extent block (any size is legal)
    else:
        tile_rows = min(max_tile_rows, _round_up(_cdiv(rows, 2), align))
    grid = (_cdiv(rows, tile_rows),)  # ragged edge blocks are masked by Pallas

    out_slab = pl.pallas_call(
        linear_kernel,
        out_shape=jax.ShapeDtypeStruct((rows, LANES), dtype),
        grid=grid,
        in_specs=[
            pl.BlockSpec(memory_space=pltpu.MemorySpace.SMEM),   # weight scalar (f32)
            pl.BlockSpec(memory_space=pltpu.MemorySpace.SMEM),   # bias scalar (f32)
            pl.BlockSpec((tile_rows, LANES), lambda i: (i, 0)),  # x tile
        ],
        out_specs=pl.BlockSpec((tile_rows, LANES), lambda i: (i, 0)),
        compiler_params=pltpu.CompilerParams(
            dimension_semantics=("parallel",),
            allow_input_fusion=[False, False, True],
        ),
    )(w32, b32, x_slab)

    if padded_n == n:
        return out_slab.reshape(n, 1)
    # TODO(synk): the ragged-N output slice is one extra HBM pass; could be
    # removed with an in-kernel masked store gated by an SMEM `n` scalar.
    return out_slab.reshape(-1)[:n].reshape(n, 1)


if __name__ == "__main__":
    key = jax.random.PRNGKey(0)
    kw, kb, k1, k2, k3 = jax.random.split(key, 5)

    # torch.nn.Linear(1, 1) init: U(-1, 1) for both weight and bias (fan_in=1).
    weight = jax.random.uniform(kw, (1, 1), jnp.float32, minval=-1.0, maxval=1.0)
    bias = jax.random.uniform(kb, (1,), jnp.float32, minval=-1.0, maxval=1.0)

    def ref(x):
        return x @ weight.T + bias

    # 1) Module-scale small batch -> fused jnp fallback path.
    x_small = jax.random.normal(k1, (8, 1), jnp.float32)
    y_small = jax.block_until_ready(linear_forward(x_small, weight, bias))
    assert y_small.shape == (8, 1)
    assert jnp.allclose(y_small, ref(x_small), atol=1e-6), "mismatch (fallback, N=8)"

    # 2) Force the Pallas kernel on a ragged N (pad + slice path, grid=(1,)).
    x_rag = jax.random.normal(k2, (300, 1), jnp.float32)
    y_rag = jax.block_until_ready(
        linear_forward(x_rag, weight, bias, small_n_threshold=0))
    assert y_rag.shape == (300, 1)
    assert jnp.allclose(y_rag, ref(x_rag), atol=1e-6), "mismatch (kernel, N=300)"

    # 3) Force the Pallas kernel on a lane-aligned N (copy-free path, grid=(2,)).
    x_al = jax.random.normal(k3, (2048, 1), jnp.float32)
    y_al = jax.block_until_ready(
        linear_forward(x_al, weight, bias, small_n_threshold=0))
    assert y_al.shape == (2048, 1)
    assert jnp.allclose(y_al, ref(x_al), atol=1e-6), "mismatch (kernel, N=2048)"

    print("KERNEL_OK")
</pallas_src>

<mosaic_0001>
module attributes {stable_mosaic.version = 11 : i64} {
  func.func @linear_kernel(%arg0: i32, %arg1: memref<1xf32, #tpu.memory_space<smem>>, %arg2: memref<1xf32, #tpu.memory_space<smem>>, %arg3: memref<8x128xf32, #tpu.memory_space<vmem>>, %arg4: memref<8x128xf32, #tpu.memory_space<vmem>>) attributes {dimension_semantics = [#tpu.dimension_semantics<parallel>], iteration_bounds = array<i64: 1>, scalar_prefetch = 0 : i64, scratch_operands = 0 : i64, tpu.core_type = #tpu.core_type<tc>, window_params = [{transform_indices = @transform_0, window_bounds = array<i64: 1>}, {transform_indices = @transform_1, window_bounds = array<i64: 1>}, {transform_indices = @transform_2, window_bounds = array<i64: 8, 128>}, {transform_indices = @transform_3, window_bounds = array<i64: 8, 128>}]} {
    %c0 = arith.constant 0 : index
    %0 = memref.load %arg1[%c0] : memref<1xf32, #tpu.memory_space<smem>>
    %c0_0 = arith.constant 0 : index
    %1 = memref.load %arg2[%c0_0] : memref<1xf32, #tpu.memory_space<smem>>
    %c0_1 = arith.constant 0 : index
    %c0_2 = arith.constant 0 : index
    %2 = vector.load %arg3[%c0_1, %c0_2] : memref<8x128xf32, #tpu.memory_space<vmem>>, vector<8x128xf32>
    %3 = vector.broadcast %0 : f32 to vector<8x128xf32>
    %4 = arith.mulf %2, %3 : vector<8x128xf32>
    %5 = vector.broadcast %1 : f32 to vector<8x128xf32>
    %6 = arith.addf %4, %5 : vector<8x128xf32>
    %c0_3 = arith.constant 0 : index
    %c0_4 = arith.constant 0 : index
    %7 = vector.load %arg4[%c0_3, %c0_4] : memref<8x128xf32, #tpu.memory_space<vmem>>, vector<8x128xf32>
    tpu.vector_store %arg4[%c0_3, %c0_4], %6 {strides = array<i32>} : memref<8x128xf32, #tpu.memory_space<vmem>>, vector<8x128xf32>,
    return
  }
  func.func @transform_0(%arg0: i32) -> i32 {
    %c0_i32 = arith.constant 0 : i32
    %c0_i32_0 = arith.constant 0 : i32
    return %c0_i32 : i32
  }
  func.func @transform_1(%arg0: i32) -> i32 {
    %c0_i32 = arith.constant 0 : i32
    %c0_i32_0 = arith.constant 0 : i32
    return %c0_i32 : i32
  }
  func.func @transform_2(%arg0: i32) -> (i32, i32) {
    %c0_i32 = arith.constant 0 : i32
    %c0_i32_0 = arith.constant 0 : i32
    return %arg0, %c0_i32 : i32, i32
  }
  func.func @transform_3(%arg0: i32) -> (i32, i32) {
    %c0_i32 = arith.constant 0 : i32
    %c0_i32_0 = arith.constant 0 : i32
    return %arg0, %c0_i32 : i32, i32
  }
}

</mosaic_0001>

<bundles_post_ra>
// kernel: tpu_custom_call.1
= control target key start
LH: loop header
LB: loop body
LE: loop exit
PB: predicated region body
PF: predicated region fallthrough
CT: control target
= control target key end

     0   :  { %10 = vsyncpa [#allocation5], 0  ;;  %s132_s0 = inlined_call_operand.<no memory space> [shape: f32[1], index: 0, kind: input, shape index: {}]   ;;  %s133_s1 = inlined_call_operand.<no memory space> [shape: f32[1], index: 1, kind: input, shape index: {}]   ;;  %s134_s2 = inlined_call_operand.hbm [shape: f32[8,128], index: 2, kind: input, shape index: {}]   ;;  %s135_s3 = inlined_call_operand.hbm [shape: f32[8,128], index: 3, kind: output, shape index: {}]  }
   0x1   :  { %11 = vsyncpa [#allocation6], 0  ;;  %s98_s12 = smov [#allocation4]  }
   0x2   :  { %s22_s13 = sshll.u32 %s98_s12, 4  ;;  %s23_s13 = int_to_ptr.vmem [resolvable:$true] %s22_s13 }
   0x3   :  { %s62_s14 = scalar_lea.vmem %s23_s13, 128  ;;  %p67_p1 = scmp.lt.s32.totalorder %s23_s13, %s23_s13 }
   0x4   :  { %p63_p0 = scmp.ne.s32.totalorder %s23_s13, %s62_s14  ;;  %p68_p2 = scmp.lt.s32.totalorder %s62_s14, %s62_s14 }
   0x6   :  { %p69_p3 = por %p68_p2, %p67_p1 }
   0x8   :  { %p70_p4 = pnand %p69_p3, %p63_p0 }
   0xa   :  { %73 = shalt.err (!%p70_p4)
}
   0xb   :  { %25 = dma.hbm_to_vmem [thread:$0]  %s134_s2, 128, %s23_s13, [#allocation5]  }
   0xc   :  { %94 = dma.done.wait [#allocation5], 128  }
   0xd   :  { %95 = vsyncadd [#allocation5], 4294967168  ;;  %v32_v0 = vstv %s132_s0  ;;  %v31_v1 = vld [vmem:[#allocation4] sm:$0xff]  ;;  %v34_v2 = vstv %s133_s1  ;;  %s99_s21 = smov [#allocation7]  }
   0xe   :  { %s43_s22 = sshll.u32 %s99_s21, 4  ;;  %v33_v3 = vmul.f32 %v32_v0, %v31_v1  ;;  %s44_s22 = int_to_ptr.vmem [resolvable:$true] %s43_s22 }
   0xf   :  { %s74_s23 = scalar_lea.vmem %s44_s22, 128  ;;  %p79_p6 = scmp.lt.s32.totalorder %s44_s22, %s44_s22 }
  0x10   :  { %v35_v4 = vadd.f32 %v34_v2, %v33_v3  ;;  %p75_p5 = scmp.ne.s32.totalorder %s44_s22, %s74_s23  ;;  %p80_p7 = scmp.lt.s32.totalorder %s74_s23, %s74_s23 }
  0x12   :  { %36 = vst [vmem:[#allocation7] sm:$0xff] %v35_v4  ;;  %p81_p8 = por %p80_p7, %p79_p6 }
  0x14   :  { %p82_p9 = pnand %p81_p8, %p75_p5 }
  0x16   :  { %85 = shalt.err (!%p82_p9)
}
  0x17   :  { %46 = dma.vmem_to_hbm [thread:$0]  %s44_s22, 128, %s135_s3, [#allocation6]  }
  0x18   :  { %96 = dma.done.wait [#allocation6], 128  }
  0x19   :  { %97 = vsyncadd [#allocation6], 4294967168 }
  0x1a   :  { %50 = vsyncpa [#allocation5], 1 }
  0x1b   :  { %51 = vsyncpa [#allocation6], 1 }

</bundles_post_ra>
